<compile_context>
chip_gen: v6e
topology: v6e:2x2x1
jax: 0.10.0
libtpu: 0.0.40
codegen_flags: <defaults>
</compile_context>

<pallas_src>
import functools

import jax
import jax.numpy as jnp
from jax import lax
from jax.experimental import pallas as pl


def _mattention_self_kernel(*refs, num_heads, batch, has_pos):
    """Whole problem in one invocation (self-attention path).

    Input refs (in order):
      x            : (F, E)   query == key == value == identity, row f = l*N + n
      [pos]        : (F, E)   query_pos == key_pos (optional)
      w_t_all      : (4E, E)  [Wq^T/sqrt(Dh); Wk^T; Wv^T; Wo^T]
      b_all        : (1, 4E)  [bq/sqrt(Dh) | bk | bv | bo]
    Output ref:
      out          : (F, E)
    """
    refs = list(refs)
    x_ref = refs.pop(0)
    pos_ref = refs.pop(0) if has_pos else None
    w_ref, b_ref, out_ref = refs

    F, E = x_ref.shape
    H = num_heads
    D = E // H
    N = batch
    HF = H * F

    x = x_ref[...]
    if has_pos:
        xq = x + pos_ref[...]          # query and key share the same pos-added input
    else:
        xq = x

    # Weight slices: sublane slices at multiples of 8; bias slices are lane
    # slices (multiples of 32) on a single (1, 4E) row.
    w = w_ref[...]
    b = b_ref[...]
    wq_t = w[0 * E:1 * E, :]
    wk_t = w[1 * E:2 * E, :]
    wv_t = w[2 * E:3 * E, :]
    wo_t = w[3 * E:4 * E, :]
    bq = b[:, 0 * E:1 * E]
    bk = b[:, 1 * E:2 * E]
    bv = b[:, 2 * E:3 * E]
    bo = b[:, 3 * E:4 * E]

    # Input projections: 3 MXU ops, full-width outputs, no lane slicing.
    # 1/sqrt(Dh) is already folded into wq_t / bq.
    qp = jnp.dot(xq, wq_t, preferred_element_type=jnp.float32) + bq   # (F, E)
    kp = jnp.dot(xq, wk_t, preferred_element_type=jnp.float32) + bk   # (F, E)
    vp = jnp.dot(x, wv_t, preferred_element_type=jnp.float32) + bv    # (F, E)

    # Head-expanded K / V: row r = h*F + g holds token g with only head-h lanes
    # kept.  This lets ONE matmul produce all heads' scores, ONE the PV
    # products and ONE the softmax denominators (extra masked FLOPs are free at
    # this size).  Head membership compared without integer division:
    #   lane c is in head c//D, row r is in head r//F
    #   c//D == r//F   <=>   (c - c%D)*F == (r - r%F)*D
    r_idx = lax.broadcasted_iota(jnp.int32, (HF, E), 0)
    c_idx = lax.broadcasted_iota(jnp.int32, (HF, E), 1)
    lane_sel = ((c_idx - c_idx % D) * F) == ((r_idx - r_idx % F) * D)
    lanemask = jnp.where(lane_sel, 1.0, 0.0).astype(jnp.float32)       # (HF, E)

    k_exp = jnp.concatenate([kp] * H, axis=0) * lanemask               # (HF, E)
    v_exp = jnp.concatenate([vp] * H, axis=0) * lanemask               # (HF, E)

    # Additive same-batch mask, built once.  Row f = l*N + n (row-major
    # (L,N,E) -> (F,E) reshape) so batch(f) = f % N; column h*F + g has
    # batch(g) = col % N because F is a multiple of N.
    ri = lax.broadcasted_iota(jnp.int32, (F, HF), 0)
    ci = lax.broadcasted_iota(jnp.int32, (F, HF), 1)
    mask_add = jnp.where((ri % N) == (ci % N), 0.0, -1e30).astype(jnp.float32)

    # Scores for all heads in one (F, HF) matmul (rhs contracted on its lane
    # dim -> no materialised transpose).
    s = lax.dot_general(qp, k_exp, (((1,), (1,)), ((), ())),
                        preferred_element_type=jnp.float32) + mask_add

    # Row-global max is a valid per-(query, head) softmax stabiliser (it is
    # constant across each head's key segment); every segment keeps >= L
    # unmasked keys so the denominator stays strictly positive.
    p = jnp.exp(s - jnp.max(s, axis=-1, keepdims=True))                # (F, HF)

    # Unnormalised PV products and per-head denominators; normalisation is
    # deferred until after the PV matmul (divide (F,E) instead of (F,HF)).
    attn_un = jnp.dot(p, v_exp, preferred_element_type=jnp.float32)    # (F, E)
    den = jnp.dot(p, lanemask, preferred_element_type=jnp.float32)     # (F, E)
    attn = attn_un * pl.reciprocal(den, approx=False)

    # Output projection + residual (identity == original query == x).
    proj = jnp.dot(attn, wo_t, preferred_element_type=jnp.float32) + bo
    out_ref[...] = (x + proj).astype(out_ref.dtype)
    # TODO(synk): output stays (F, 32)-shaped (32/128-lane masked store); a
    # lane-dense repack is not worth it for a single ~2 KB store.


def prepare_mattention_params(w_in, b_in, w_out, b_out, *, num_heads):
    """One-time (per parameter load, NOT per forward call) weight packing.

    Returns:
      w_t_all: (4E, E)  [Wq^T/sqrt(Dh); Wk^T; Wv^T; Wo^T]   (for x @ slice)
      b_all:   (1, 4E)  [bq/sqrt(Dh) | bk | bv | bo]
    """
    E = w_out.shape[0]
    Dh = E // num_heads
    scale = 1.0 / float(Dh) ** 0.5
    wq, wk, wv = w_in[:E], w_in[E:2 * E], w_in[2 * E:]
    bq, bk, bv = b_in[:E], b_in[E:2 * E], b_in[2 * E:]
    w_t_all = jnp.concatenate([(wq * scale).T, wk.T, wv.T, w_out.T], axis=0)
    b_all = jnp.concatenate([bq * scale, bk, bv, b_out]).reshape(1, 4 * E)
    return w_t_all, b_all


def mattention_forward(query, key=None, value=None, identity=None,
                       query_pos=None, key_pos=None, attn_mask=None,
                       key_padding_mask=None, *, packed_params, num_heads):
    """Matches MAttention.forward (eval mode); external layout (L, N, E)."""
    if key is None:
        key = query
    if value is None:
        value = key
    if identity is None:
        identity = query
    if key_pos is None and query_pos is not None and query_pos.shape == key.shape:
        key_pos = query_pos

    # Deduplicated self-attention fast path (the module's default usage).
    if not (key is query and value is query and identity is query
            and key_pos is query_pos and attn_mask is None
            and key_padding_mask is None):
        # TODO(synk): general cross-attention / masked paths not implemented.
        raise NotImplementedError(
            "Only the default self-attention path (aliased key/value/identity, "
            "no masks) is implemented.")

    L, N, E = query.shape
    F = L * N
    w_t_all, b_all = packed_params
    has_pos = query_pos is not None

    # Free (contiguous) reshapes only; the per-batch structure is handled by
    # the in-kernel same-batch mask, so no (L,N)<->(N,L) transposes at all.
    args = [query.reshape(F, E)]
    if has_pos:
        args.append(query_pos.reshape(F, E))
    args += [w_t_all, b_all]

    out = pl.pallas_call(
        functools.partial(_mattention_self_kernel, num_heads=num_heads,
                          batch=N, has_pos=has_pos),
        out_shape=jax.ShapeDtypeStruct((F, E), query.dtype),
    )(*args)
    return out.reshape(L, N, E)


def _reference(query, query_pos, params, num_heads):
    """Pure-JAX replica of MAttention.forward for correctness checking."""
    w_in, b_in, w_out, b_out = params
    key = query
    value = key
    identity = query
    key_pos = query_pos  # query_pos.shape == key.shape
    q = query + query_pos
    k = key + key_pos
    v = value
    L, N, E = q.shape
    D = E // num_heads
    qp = jnp.einsum('lne,fe->lnf', q, w_in[:E]) + b_in[:E]
    kp = jnp.einsum('lne,fe->lnf', k, w_in[E:2 * E]) + b_in[E:2 * E]
    vp = jnp.einsum('lne,fe->lnf', v, w_in[2 * E:]) + b_in[2 * E:]
    qh = qp.reshape(L, N, num_heads, D)
    kh = kp.reshape(L, N, num_heads, D)
    vh = vp.reshape(L, N, num_heads, D)
    s = jnp.einsum('lnhd,mnhd->nhlm', qh, kh) / jnp.sqrt(float(D))
    p = jax.nn.softmax(s, axis=-1)
    o = jnp.einsum('nhlm,mnhd->lnhd', p, vh).reshape(L, N, E)
    o = jnp.einsum('lne,fe->lnf', o, w_out) + b_out
    return identity + o


if __name__ == "__main__":
    L, N, E, H = 8, 2, 32, 4   # seq=8, batch=2, embed_dims=32, num_heads=4

    k0 = jax.random.PRNGKey(0)
    k1, k2, k3, k4, k5, k6 = jax.random.split(k0, 6)

    query = jax.random.normal(k1, (L, N, E), jnp.float32)
    query_pos = 0.1 * jax.random.normal(k2, (L, N, E), jnp.float32)

    # Deterministic synthetic parameters (shapes from nn.MultiheadAttention).
    w_in = jax.random.normal(k3, (3 * E, E), jnp.float32) / jnp.sqrt(float(E))
    b_in = 0.02 * jax.random.normal(k4, (3 * E,), jnp.float32)
    w_out = jax.random.normal(k5, (E, E), jnp.float32) / jnp.sqrt(float(E))
    b_out = 0.02 * jax.random.normal(k6, (E,), jnp.float32)

    # One-time parameter packing (hoisted out of the per-forward hot path).
    packed = prepare_mattention_params(w_in, b_in, w_out, b_out, num_heads=H)

    out = mattention_forward(query, query_pos=query_pos,
                             packed_params=packed, num_heads=H)
    out = jax.block_until_ready(out)

    ref = _reference(query, query_pos, (w_in, b_in, w_out, b_out), H)
    assert out.shape == (L, N, E)
    # Exact reciprocal now; remaining error is f32 rounding / reduction order.
    assert jnp.allclose(out, ref, atol=1e-3, rtol=1e-3), \
        f"max abs err {jnp.max(jnp.abs(out - ref))}"

    print("KERNEL_OK")
</pallas_src>

<mosaic_0001>
module attributes {stable_mosaic.version = 11 : i64} {
  func.func @_mattention_self_kernel(%arg0: memref<16x32xf32, #tpu.memory_space<vmem>>, %arg1: memref<16x32xf32, #tpu.memory_space<vmem>>, %arg2: memref<128x32xf32, #tpu.memory_space<vmem>>, %arg3: memref<1x128xf32, #tpu.memory_space<vmem>>, %arg4: memref<16x32xf32, #tpu.memory_space<vmem>>) attributes {dimension_semantics = [], scalar_prefetch = 0 : i64, scratch_operands = 0 : i64, tpu.core_type = #tpu.core_type<tc>} {
    %c0 = arith.constant 0 : index
    %c0_0 = arith.constant 0 : index
    %0 = vector.load %arg0[%c0, %c0_0] : memref<16x32xf32, #tpu.memory_space<vmem>>, vector<16x32xf32>
    %c0_1 = arith.constant 0 : index
    %c0_2 = arith.constant 0 : index
    %1 = vector.load %arg1[%c0_1, %c0_2] : memref<16x32xf32, #tpu.memory_space<vmem>>, vector<16x32xf32>
    %2 = arith.addf %0, %1 : vector<16x32xf32>
    %c0_3 = arith.constant 0 : index
    %c0_4 = arith.constant 0 : index
    %3 = vector.load %arg2[%c0_3, %c0_4] : memref<128x32xf32, #tpu.memory_space<vmem>>, vector<128x32xf32>
    %c0_5 = arith.constant 0 : index
    %c0_6 = arith.constant 0 : index
    %4 = vector.load %arg3[%c0_5, %c0_6] : memref<1x128xf32, #tpu.memory_space<vmem>>, vector<1x128xf32>
    %5 = vector.extract_strided_slice %3 {offsets = [0, 0], sizes = [32, 32], strides = [1, 1]} : vector<128x32xf32> to vector<32x32xf32>
    %6 = vector.extract_strided_slice %3 {offsets = [32, 0], sizes = [32, 32], strides = [1, 1]} : vector<128x32xf32> to vector<32x32xf32>
    %7 = vector.extract_strided_slice %3 {offsets = [64, 0], sizes = [32, 32], strides = [1, 1]} : vector<128x32xf32> to vector<32x32xf32>
    %8 = vector.extract_strided_slice %3 {offsets = [96, 0], sizes = [32, 32], strides = [1, 1]} : vector<128x32xf32> to vector<32x32xf32>
    %9 = vector.extract_strided_slice %4 {offsets = [0, 0], sizes = [1, 32], strides = [1, 1]} : vector<1x128xf32> to vector<1x32xf32>
    %10 = vector.extract_strided_slice %4 {offsets = [0, 32], sizes = [1, 32], strides = [1, 1]} : vector<1x128xf32> to vector<1x32xf32>
    %11 = vector.extract_strided_slice %4 {offsets = [0, 64], sizes = [1, 32], strides = [1, 1]} : vector<1x128xf32> to vector<1x32xf32>
    %12 = vector.extract_strided_slice %4 {offsets = [0, 96], sizes = [1, 32], strides = [1, 1]} : vector<1x128xf32> to vector<1x32xf32>
    %cst = arith.constant dense<0.000000e+00> : vector<16x32xf32>
    %13 = tpu.matmul %2, %5, %cst {dimension_numbers = #tpu.dot_dimension_numbers<[1], [0], [0], [1], [0, 0, 1, 1], [], []>} : vector<16x32xf32>, vector<32x32xf32>, vector<16x32xf32> -> vector<16x32xf32>
    %14 = vector.broadcast %9 : vector<1x32xf32> to vector<16x32xf32>
    %15 = arith.addf %13, %14 : vector<16x32xf32>
    %cst_7 = arith.constant dense<0.000000e+00> : vector<16x32xf32>
    %16 = tpu.matmul %2, %6, %cst_7 {dimension_numbers = #tpu.dot_dimension_numbers<[1], [0], [0], [1], [0, 0, 1, 1], [], []>} : vector<16x32xf32>, vector<32x32xf32>, vector<16x32xf32> -> vector<16x32xf32>
    %17 = vector.broadcast %10 : vector<1x32xf32> to vector<16x32xf32>
    %18 = arith.addf %16, %17 : vector<16x32xf32>
    %cst_8 = arith.constant dense<0.000000e+00> : vector<16x32xf32>
    %19 = tpu.matmul %0, %7, %cst_8 {dimension_numbers = #tpu.dot_dimension_numbers<[1], [0], [0], [1], [0, 0, 1, 1], [], []>} : vector<16x32xf32>, vector<32x32xf32>, vector<16x32xf32> -> vector<16x32xf32>
    %20 = vector.broadcast %11 : vector<1x32xf32> to vector<16x32xf32>
    %21 = arith.addf %19, %20 : vector<16x32xf32>
    %22 = tpu.iota {dimensions = array<i32: 0>} : vector<64x32xi32>
    %23 = tpu.iota {dimensions = array<i32: 1>} : vector<64x32xi32>
    %c8_i32 = arith.constant 8 : i32
    %c0_i32 = arith.constant 0 : i32
    %24 = arith.cmpi eq, %c8_i32, %c0_i32 : i32
    %c1_i32 = arith.constant 1 : i32
    %25 = arith.select %24, %c1_i32, %c8_i32 : i32
    %26 = vector.broadcast %25 : i32 to vector<64x32xi32>
    %27 = arith.remsi %23, %26 : vector<64x32xi32>
    %c0_i32_9 = arith.constant 0 : i32
    %28 = vector.broadcast %c0_i32_9 : i32 to vector<64x32xi32>
    %29 = arith.cmpi ne, %27, %28 : vector<64x32xi32>
    %c0_i32_10 = arith.constant 0 : i32
    %30 = vector.broadcast %c0_i32_10 : i32 to vector<64x32xi32>
    %31 = arith.cmpi slt, %27, %30 : vector<64x32xi32>
    %c0_i32_11 = arith.constant 0 : i32
    %32 = arith.cmpi slt, %25, %c0_i32_11 : i32
    %33 = vector.broadcast %32 : i1 to vector<64x32xi1>
    %34 = vector.broadcast %33 : vector<64x32xi1> to vector<64x32xi1>
    %35 = arith.xori %31, %34 : vector<64x32xi1>
    %36 = arith.andi %35, %29 : vector<64x32xi1>
    %37 = vector.broadcast %25 : i32 to vector<64x32xi32>
    %38 = arith.addi %27, %37 : vector<64x32xi32>
    %39 = arith.select %36, %38, %27 : vector<64x32xi1>, vector<64x32xi32>
    %40 = arith.subi %23, %39 : vector<64x32xi32>
    %c16_i32 = arith.constant 16 : i32
    %41 = vector.broadcast %c16_i32 : i32 to vector<64x32xi32>
    %42 = arith.muli %40, %41 : vector<64x32xi32>
    %c16_i32_12 = arith.constant 16 : i32
    %c0_i32_13 = arith.constant 0 : i32
    %43 = arith.cmpi eq, %c16_i32_12, %c0_i32_13 : i32
    %c1_i32_14 = arith.constant 1 : i32
    %44 = arith.select %43, %c1_i32_14, %c16_i32_12 : i32
    %45 = vector.broadcast %44 : i32 to vector<64x32xi32>
    %46 = arith.remsi %22, %45 : vector<64x32xi32>
    %c0_i32_15 = arith.constant 0 : i32
    %47 = vector.broadcast %c0_i32_15 : i32 to vector<64x32xi32>
    %48 = arith.cmpi ne, %46, %47 : vector<64x32xi32>
    %c0_i32_16 = arith.constant 0 : i32
    %49 = vector.broadcast %c0_i32_16 : i32 to vector<64x32xi32>
    %50 = arith.cmpi slt, %46, %49 : vector<64x32xi32>
    %c0_i32_17 = arith.constant 0 : i32
    %51 = arith.cmpi slt, %44, %c0_i32_17 : i32
    %52 = vector.broadcast %51 : i1 to vector<64x32xi1>
    %53 = vector.broadcast %52 : vector<64x32xi1> to vector<64x32xi1>
    %54 = arith.xori %50, %53 : vector<64x32xi1>
    %55 = arith.andi %54, %48 : vector<64x32xi1>
    %56 = vector.broadcast %44 : i32 to vector<64x32xi32>
    %57 = arith.addi %46, %56 : vector<64x32xi32>
    %58 = arith.select %55, %57, %46 : vector<64x32xi1>, vector<64x32xi32>
    %59 = arith.subi %22, %58 : vector<64x32xi32>
    %c8_i32_18 = arith.constant 8 : i32
    %60 = vector.broadcast %c8_i32_18 : i32 to vector<64x32xi32>
    %61 = arith.muli %59, %60 : vector<64x32xi32>
    %62 = arith.cmpi eq, %42, %61 : vector<64x32xi32>
    %cst_19 = arith.constant 1.000000e+00 : f32
    %cst_20 = arith.constant 0.000000e+00 : f32
    %63 = vector.broadcast %cst_19 : f32 to vector<64x32xf32>
    %64 = vector.broadcast %cst_20 : f32 to vector<64x32xf32>
    %65 = arith.select %62, %63, %64 : vector<64x32xi1>, vector<64x32xf32>
    %66 = tpu.concatenate %18, %18, %18, %18 in 0 : vector<16x32xf32>, vector<16x32xf32>, vector<16x32xf32>, vector<16x32xf32> -> vector<64x32xf32>
    %67 = arith.mulf %66, %65 : vector<64x32xf32>
    %68 = tpu.concatenate %21, %21, %21, %21 in 0 : vector<16x32xf32>, vector<16x32xf32>, vector<16x32xf32>, vector<16x32xf32> -> vector<64x32xf32>
    %69 = arith.mulf %68, %65 : vector<64x32xf32>
    %70 = tpu.iota {dimensions = array<i32: 0>} : vector<16x64xi32>
    %71 = tpu.iota {dimensions = array<i32: 1>} : vector<16x64xi32>
    %c2_i32 = arith.constant 2 : i32
    %c0_i32_21 = arith.constant 0 : i32
    %72 = arith.cmpi eq, %c2_i32, %c0_i32_21 : i32
    %c1_i32_22 = arith.constant 1 : i32
    %73 = arith.select %72, %c1_i32_22, %c2_i32 : i32
    %74 = vector.broadcast %73 : i32 to vector<16x64xi32>
    %75 = arith.remsi %70, %74 : vector<16x64xi32>
    %c0_i32_23 = arith.constant 0 : i32
    %76 = vector.broadcast %c0_i32_23 : i32 to vector<16x64xi32>
    %77 = arith.cmpi ne, %75, %76 : vector<16x64xi32>
    %c0_i32_24 = arith.constant 0 : i32
    %78 = vector.broadcast %c0_i32_24 : i32 to vector<16x64xi32>
    %79 = arith.cmpi slt, %75, %78 : vector<16x64xi32>
    %c0_i32_25 = arith.constant 0 : i32
    %80 = arith.cmpi slt, %73, %c0_i32_25 : i32
    %81 = vector.broadcast %80 : i1 to vector<16x64xi1>
    %82 = vector.broadcast %81 : vector<16x64xi1> to vector<16x64xi1>
    %83 = arith.xori %79, %82 : vector<16x64xi1>
    %84 = arith.andi %83, %77 : vector<16x64xi1>
    %85 = vector.broadcast %73 : i32 to vector<16x64xi32>
    %86 = arith.addi %75, %85 : vector<16x64xi32>
    %87 = arith.select %84, %86, %75 : vector<16x64xi1>, vector<16x64xi32>
    %c2_i32_26 = arith.constant 2 : i32
    %c0_i32_27 = arith.constant 0 : i32
    %88 = arith.cmpi eq, %c2_i32_26, %c0_i32_27 : i32
    %c1_i32_28 = arith.constant 1 : i32
    %89 = arith.select %88, %c1_i32_28, %c2_i32_26 : i32
    %90 = vector.broadcast %89 : i32 to vector<16x64xi32>
    %91 = arith.remsi %71, %90 : vector<16x64xi32>
    %c0_i32_29 = arith.constant 0 : i32
    %92 = vector.broadcast %c0_i32_29 : i32 to vector<16x64xi32>
    %93 = arith.cmpi ne, %91, %92 : vector<16x64xi32>
    %c0_i32_30 = arith.constant 0 : i32
    %94 = vector.broadcast %c0_i32_30 : i32 to vector<16x64xi32>
    %95 = arith.cmpi slt, %91, %94 : vector<16x64xi32>
    %c0_i32_31 = arith.constant 0 : i32
    %96 = arith.cmpi slt, %89, %c0_i32_31 : i32
    %97 = vector.broadcast %96 : i1 to vector<16x64xi1>
    %98 = vector.broadcast %97 : vector<16x64xi1> to vector<16x64xi1>
    %99 = arith.xori %95, %98 : vector<16x64xi1>
    %100 = arith.andi %99, %93 : vector<16x64xi1>
    %101 = vector.broadcast %89 : i32 to vector<16x64xi32>
    %102 = arith.addi %91, %101 : vector<16x64xi32>
    %103 = arith.select %100, %102, %91 : vector<16x64xi1>, vector<16x64xi32>
    %104 = arith.cmpi eq, %87, %103 : vector<16x64xi32>
    %cst_32 = arith.constant 0.000000e+00 : f32
    %cst_33 = arith.constant -1.000000e+30 : f32
    %105 = vector.broadcast %cst_32 : f32 to vector<16x64xf32>
    %106 = vector.broadcast %cst_33 : f32 to vector<16x64xf32>
    %107 = arith.select %104, %105, %106 : vector<16x64xi1>, vector<16x64xf32>
    %cst_34 = arith.constant dense<0.000000e+00> : vector<16x64xf32>
    %108 = tpu.matmul %15, %67, %cst_34 {dimension_numbers = #tpu.dot_dimension_numbers<[1], [1], [0], [0], [0, 0, 1, 0], [], []>} : vector<16x32xf32>, vector<64x32xf32>, vector<16x64xf32> -> vector<16x64xf32>
    %109 = arith.addf %108, %107 : vector<16x64xf32>
    %cst_35 = arith.constant dense<0xFF800000> : vector<16xf32>
    %110 = vector.multi_reduction <maximumf>, %109, %cst_35 [1] : vector<16x64xf32> to vector<16xf32>
    %111 = vector.shape_cast %110 : vector<16xf32> to vector<16x1xf32>
    %112 = vector.broadcast %111 : vector<16x1xf32> to vector<16x64xf32>
    %113 = arith.subf %109, %112 : vector<16x64xf32>
    %114 = math.exp %113 : vector<16x64xf32>
    %cst_36 = arith.constant dense<0.000000e+00> : vector<16x32xf32>
    %115 = tpu.matmul %114, %69, %cst_36 {dimension_numbers = #tpu.dot_dimension_numbers<[1], [0], [0], [1], [0, 0, 1, 1], [], []>} : vector<16x64xf32>, vector<64x32xf32>, vector<16x32xf32> -> vector<16x32xf32>
    %cst_37 = arith.constant dense<0.000000e+00> : vector<16x32xf32>
    %116 = tpu.matmul %114, %65, %cst_37 {dimension_numbers = #tpu.dot_dimension_numbers<[1], [0], [0], [1], [0, 0, 1, 1], [], []>} : vector<16x64xf32>, vector<64x32xf32>, vector<16x32xf32> -> vector<16x32xf32>
    %117 = tpu.reciprocal %116 : vector<16x32xf32> -> vector<16x32xf32>
    %118 = arith.mulf %115, %117 : vector<16x32xf32>
    %cst_38 = arith.constant dense<0.000000e+00> : vector<16x32xf32>
    %119 = tpu.matmul %118, %8, %cst_38 {dimension_numbers = #tpu.dot_dimension_numbers<[1], [0], [0], [1], [0, 0, 1, 1], [], []>} : vector<16x32xf32>, vector<32x32xf32>, vector<16x32xf32> -> vector<16x32xf32>
    %120 = vector.broadcast %12 : vector<1x32xf32> to vector<16x32xf32>
    %121 = arith.addf %119, %120 : vector<16x32xf32>
    %122 = arith.addf %0, %121 : vector<16x32xf32>
    %c0_39 = arith.constant 0 : index
    %c0_40 = arith.constant 0 : index
    %123 = vector.load %arg4[%c0_39, %c0_40] : memref<16x32xf32, #tpu.memory_space<vmem>>, vector<16x32xf32>
    tpu.vector_store %arg4[%c0_39, %c0_40], %122 {strides = array<i32>} : memref<16x32xf32, #tpu.memory_space<vmem>>, vector<16x32xf32>,
    return
  }
}

</mosaic_0001>

<bundles_post_ra>
// kernel: tpu_custom_call.1
= control target key start
LH: loop header
LB: loop body
LE: loop exit
PB: predicated region body
PF: predicated region fallthrough
CT: control target
= control target key end

     0   :  { %vm47_vm0 = vcmask 261120   ;;  %s1400_s0 = inlined_call_operand.vmem [shape: f32[16,32], index: 0, kind: input, shape index: {}]   ;;  %s1401_s1 = inlined_call_operand.vmem [shape: f32[16,32], index: 1, kind: input, shape index: {}]   ;;  %s1402_s2 = inlined_call_operand.vmem [shape: f32[128,32], index: 2, kind: input, shape index: {}]   ;;  %s1403_s3 = inlined_call_operand.vmem [shape: f32[1,128], index: 3, kind: input, shape index: {}]   ;;  %s1404_s4 = inlined_call_operand.hbm [shape: f32[16,32], index: 4, kind: output, shape index: {}]  }
   0x1   :  { %v31_v0 = vld [vmem:[%s1402_s2 + $0x38] sm:$0xff]  ;;  %v30_v1 = vld [vmem:[%s1402_s2 + $0x30] sm:$0xff]  ;;  %v29_v2 = vld [vmem:[%s1402_s2 + $0x28] sm:$0xff] }
   0x2   :  { %978 = vmatprep.subr.mxu1 %v31_v0  ;;  %v1153_v3 = vld [vmem:[%s1400_s0] sm:$0xff]  ;;  %v1162_v6 = vld [vmem:[%s1400_s0 + $0x8] sm:$0xff]  ;;  %v27_v8 = vld [vmem:[%s1402_s2 + $0x18] sm:$0xff] }
   0x3   :  { %v20_v4 = vld [vmem:[%s1401_s1] sm:$0xff]  ;;  %979 = vmatpush3.msra.mxu1 %v31_v0  ;;  %v21_v7 = vld [vmem:[%s1401_s1 + $0x8] sm:$0xff]  ;;  %967 = vmatprep.subr.mxu0 %v27_v8  ;;  %v26_v9 = vld [vmem:[%s1402_s2 + $0x10] sm:$0xff] }
   0x4   :  { %v22_v5 = vadd.f32 %v20_v4, %v1153_v3  ;;  %980 = vmatprep.subr.mxu1 %v30_v1  ;;  %v28_v10 = vld [vmem:[%s1402_s2 + $0x20] sm:$0xff] }
   0x5   :  { %981 = vmatpush3.msra.mxu1 %v30_v1 }
   0x6   :  { %986 = vmatprep.mubr.msk.f32.mxu1 %vm47_vm0, %v22_v5 }
   0x7   :  { %9 = vsyncpa [#allocation3], 0  ;;  %982 = vmatprep.subr.mxu1 %v29_v2  ;;  %v23_v11 = vadd.f32 %v21_v7, %v1162_v6  ;;  %968 = vmatpush3.msra.mxu0 %v27_v8  ;;  %v25_v12 = vld [vmem:[%s1402_s2 + $0x8] sm:$0xff]  ;;  %v24_v13 = vld [vmem:[%s1402_s2] sm:$0xff]  ;;  %s1107_s13 = smov 96   ;;  %v291_v15 = vlaneseq  ;;  %v1108_v51 = vmov 0.0  }
   0x8   :  { %983 = vmatpush3.msra.mxu1 %v29_v2  ;;  %969 = vmatprep.subr.mxu0 %v26_v9  ;;  %v1187_v14 = vld [vmem:[%s1403_s3] ss:$0 sm:$0xff]  ;;  %v35_v19 = vld [vmem:[%s1402_s2 + $0x58] sm:$0xff]  ;;  %v34_v20 = vld [vmem:[%s1402_s2 + $0x50] sm:$0xff]  ;;  %vm605_vm11 = vcmask 523264   ;;  %s1110_s21 = smov 64  }
   0x9   :  { %984 = vmatprep.subr.mxu1 %v28_v10  ;;  %970 = vmatpush3.msra.mxu0 %v26_v9  ;;  %v1195_v16 = vshrl.u32 %v291_v15, 7  ;;  %v1197_v17 = vand.u32 127, %v291_v15  ;;  %v33_v23 = vld [vmem:[%s1402_s2 + $0x48] sm:$0xff]  ;;  %v32_v25 = vld [vmem:[%s1402_s2 + $0x40] sm:$0xff]  ;;  %v39_v43 = vld [vmem:[%s1402_s2 + $0x78] sm:$0xff]  ;;  %s1112_s30 = smov 32  }
   0xa   :  { %985 = vmatpush3.msra.mxu1 %v28_v10  ;;  %971 = vmatprep.subr.mxu0 %v25_v12  ;;  %v38_v47 = vld [vmem:[%s1402_s2 + $0x70] sm:$0xff]  ;;  %v37_v60 = vld [vmem:[%s1402_s2 + $0x68] sm:$0xff]  ;;  %v36_v4 = vld [vmem:[%s1402_s2 + $0x60] sm:$0xff]  ;;  %s1113_s2 = smov [#allocation2]  }
   0xb   :  { %987 = vmatmul.mubr.msk.f32.vlgmr.msra.gmra.mxu1 %vm47_vm0, %v23_v11  ;;  %972 = vmatpush3.msra.mxu0 %v25_v12  ;;  %v1200_v18 = vadd.s32 8, %v1195_v16  ;;  %v488_v22 = vand.u32 1, %v1197_v17  ;;  %v299_v26 = vadd.s32 56, %v1195_v16  ;;  %v298_v27 = vadd.s32 48, %v1195_v16  ;;  %s871_s5 = sshll.u32 %s1113_s2, 4  ;;  %s872_s5 = int_to_ptr.vmem [resolvable:$true] %s871_s5 }
   0xc   :  { %973 = vmatprep.subr.mxu0 %v24_v13  ;;  %975 = vmatprep.mubr.msk.f32.mxu0 %vm47_vm0, %v22_v5  ;;  %v306_v28 = vand.u32 7, %v1197_v17  ;;  %v297_v31 = vadd.s32 40, %v1195_v16  ;;  %v296_v36 = vadd.s32 32, %v1195_v16  ;;  %v295_v39 = vadd.s32 24, %v1195_v16  ;;  %s1085_s6 = scalar_lea.vmem %s872_s5, 256  ;;  %p1090_p1 = scmp.lt.s32.totalorder %s872_s5, %s872_s5 }
   0xd   :  { %974 = vmatpush3.msra.mxu0 %v24_v13  ;;  %129 = vrot.lane.b32.xlu0 %v1187_v14, %s1107_s13  ;;  %v471_v21 = vand.u32 1, %v1200_v18  ;;  %v369_v29 = vand.u32 15, %v299_v26  ;;  %v362_v30 = vand.u32 15, %v298_v27  ;;  %v294_v46 = vadd.s32 16, %v1195_v16  ;;  %p1086_p0 = scmp.ne.s32.totalorder %s872_s5, %s1085_s6  ;;  %p1091_p2 = scmp.lt.s32.totalorder %s1085_s6, %s1085_s6 }
   0xe   :  { %976 = vmatmul.mubr.msk.f32.vlgmr.msra.gmra.mxu0 %vm47_vm0, %v23_v11  ;;  %989 = vmatprep.subr.mxu0 %v35_v19  ;;  %v314_v32 = vsub.s32 %v1197_v17, %v306_v28  ;;  %v355_v35 = vand.u32 15, %v297_v31  ;;  %v348_v42 = vand.u32 15, %v296_v36  ;;  %v341_v45 = vand.u32 15, %v295_v39 }
   0xf   :  { %997 = vmatprep.mubr.msk.f32.mxu0 %vm47_vm0, %v1153_v3  ;;  %990 = vmatpush3.msra.mxu0 %v35_v19  ;;  %vm1215_vm1 = vcmp.eq.s32.totalorder %v471_v21, %v488_v22  ;;  %v419_v33 = vsub.s32 %v299_v26, %v369_v29  ;;  %v418_v34 = vsub.s32 %v298_v27, %v362_v30  ;;  %v334_v57 = vand.u32 15, %v294_v46  ;;  %p1092_p3 = por %p1091_p2, %p1090_p1 }
  0x10   :  { %991 = vmatprep.subr.mxu0 %v34_v20  ;;  %v1230_v37 = vmul.u32 16, %v314_v32  ;;  %v417_v41 = vsub.s32 %v297_v31, %v355_v35  ;;  %v416_v49 = vsub.s32 %v296_v36, %v348_v42  ;;  %v415_v56 = vsub.s32 %v295_v39, %v341_v45 }
  0x11   :  { %992 = vmatpush3.msra.mxu0 %v34_v20  ;;  %v427_v38 = vmul.u32 8, %v419_v33  ;;  %v426_v40 = vmul.u32 8, %v418_v34  ;;  %v414_v7 = vsub.s32 %v294_v46, %v334_v57  ;;  %v327_v8 = vand.u32 15, %v1200_v18  ;;  %p1093_p4 = pnand %p1092_p3, %p1086_p0 }
  0x12   :  { %993 = vmatprep.subr.mxu0 %v33_v23  ;;  %v425_v48 = vmul.u32 8, %v417_v41  ;;  %v424_v61 = vmul.u32 8, %v416_v49  ;;  %v320_v15 = vand.u32 15, %v1195_v16  ;;  %v464_v36 = vand.u32 1, %v1195_v16 }
  0x13   :  { %994 = vmatpush3.msra.mxu0 %v33_v23  ;;  %vm1234_vm2 = vcmp.eq.s32.totalorder %v1230_v37, %v427_v38  ;;  %vm1240_vm3 = vcmp.eq.s32.totalorder %v1230_v37, %v426_v40  ;;  %v423_v5 = vmul.u32 8, %v415_v56  ;;  %v422_v12 = vmul.u32 8, %v414_v7 }
  0x14   :  { %995 = vmatprep.subr.mxu0 %v32_v25  ;;  %v1246_v52 = vsel %vm1234_vm2, 1.0, %v1108_v51  ;;  %v1250_v55 = vsel %vm1240_vm3, 1.0, %v1108_v51  ;;  %vm1254_vm4 = vcmp.eq.s32.totalorder %v1230_v37, %v425_v48  ;;  %vm1268_vm5 = vcmp.eq.s32.totalorder %v1230_v37, %v424_v61 }
  0x15   :  { %996 = vmatpush3.msra.mxu0 %v32_v25  ;;  %v1263_v1 = vsel %vm1254_vm4, 1.0, %v1108_v51  ;;  %v1278_v10 = vsel %vm1268_vm5, 1.0, %v1108_v51  ;;  %vm1282_vm6 = vcmp.eq.s32.totalorder %v1230_v37, %v423_v5  ;;  %v413_v13 = vsub.s32 %v1200_v18, %v327_v8 }
  0x16   :  { %998 = vmatmul.mubr.msk.f32.vlgmr.msra.gmra.mxu0 %vm47_vm0, %v1162_v6  ;;  %v1292_v20 = vsel %vm1282_vm6, 1.0, %v1108_v51  ;;  %vm1296_vm7 = vcmp.eq.s32.totalorder %v1230_v37, %v422_v12  ;;  %v412_v18 = vsub.s32 %v1195_v16, %v320_v15  ;;  %vm496_vm10 = vcmp.eq.s32.totalorder %v464_v36, %v488_v22 }
  0x17   :  { %v421_v23 = vmul.u32 8, %v413_v13  ;;  %v438_v26 = vsel %vm1296_vm7, 1.0, %v1108_v51 }
  0x18   :  { %v420_v28 = vmul.u32 8, %v412_v18 }
  0x19   :  { %vm1307_vm8 = vcmp.eq.s32.totalorder %v1230_v37, %v421_v23 }
  0x1a   :  { %v437_v30 = vsel %vm1307_vm8, 1.0, %v1108_v51  ;;  %vm1316_vm9 = vcmp.eq.s32.totalorder %v1230_v37, %v420_v28  ;;  %v1109_v37 = vmov -1e+30  }
  0x1b   :  { %v436_v33 = vsel %vm1316_vm9, 1.0, %v1108_v51  ;;  %v499_v38 = vsel %vm1215_vm1, 0.0, %v1109_v37  ;;  %v498_v40 = vsel %vm496_vm10, 0.0, %v1109_v37 }
  0x7f   :  { %v130_v44 = vpop.permute.xlu0 %129 }
  0xcb   :  { %v988_v50 = vpop.f32.mrf.mxu1 }
  0xcc   :  { %v204_v53 = vadd.f32 %v988_v50, %v130_v44 }
  0xcd   :  { %v198_v54 = vpop.f32.mrf.mxu1 }
  0xce   :  { %v199_v58 = vadd.f32 %v198_v54, %v130_v44  ;;  %v451_v59 = vmul.f32 %v1246_v52, %v204_v53  ;;  %v977_v62 = vpop.f32.mrf.mxu0  ;;  %v449_v9 = vmul.f32 %v1263_v1, %v204_v53  ;;  %v447_v25 = vmul.f32 %v1292_v20, %v204_v53 }
  0xcf   :  { %v445_v32 = vmul.f32 %v437_v30, %v204_v53  ;;  %v126_v35 = vadd.f32 %v977_v62, %v1187_v14 }
  0xd0   :  { %1000 = vmatprep.subr.msk.mxu1 %vm47_vm0, %v451_v59  ;;  %v450_v63 = vmul.f32 %v1250_v55, %v199_v58  ;;  %v120_v0 = vpop.f32.mrf.mxu0  ;;  %v448_v19 = vmul.f32 %v1278_v10, %v199_v58  ;;  %v446_v29 = vmul.f32 %v438_v26, %v199_v58  ;;  %v444_v34 = vmul.f32 %v436_v33, %v199_v58 }
  0xd1   :  { %1001 = vmatpush3.xpose.msk.msra.mxu1 %vm47_vm0, %v451_v59  ;;  %v121_v2 = vadd.f32 %v1187_v14, %v120_v0 }
  0xd2   :  { %1002 = vmatprep.subr.msk.mxu1 %vm47_vm0, %v450_v63 }
  0xd3   :  { %1016 = vmatprep.mubr.msk.f32.mxu1 %vm47_vm0, %v121_v2  ;;  %v1111_v2 = vmov 1.0  }
  0xd5   :  { %1003 = vmatpush3.xpose.msk.msra.mxu1 %vm47_vm0, %v450_v63 }
  0xd6   :  { %1004 = vmatprep.subr.msk.mxu1 %vm47_vm0, %v449_v9  ;;  %v999_v16 = vpop.f32.mrf.mxu0 }
  0xd8   :  { %v282_v24 = vpop.f32.mrf.mxu0 }
  0xd9   :  { %1005 = vmatpush3.xpose.msk.msra.mxu1 %vm47_vm0, %v449_v9 }
  0xda   :  { %1006 = vmatprep.subr.msk.mxu1 %vm47_vm0, %v448_v19 }
  0xdd   :  { %1007 = vmatpush3.xpose.msk.msra.mxu1 %vm47_vm0, %v448_v19 }
  0xde   :  { %1008 = vmatprep.subr.msk.mxu1 %vm47_vm0, %v447_v25 }
  0xe1   :  { %1009 = vmatpush3.xpose.msk.msra.mxu1 %vm47_vm0, %v447_v25 }
  0xe2   :  { %1010 = vmatprep.subr.msk.mxu1 %vm47_vm0, %v446_v29 }
  0xe5   :  { %1011 = vmatpush3.xpose.msk.msra.mxu1 %vm47_vm0, %v446_v29 }
  0xe6   :  { %1012 = vmatprep.subr.msk.mxu1 %vm47_vm0, %v445_v32 }
  0xe9   :  { %1013 = vmatpush3.xpose.msk.msra.mxu1 %vm47_vm0, %v445_v32 }
  0xea   :  { %1014 = vmatprep.subr.msk.mxu1 %vm47_vm0, %v444_v34 }
  0xed   :  { %1015 = vmatpush3.xpose.msk.msra.mxu1 %vm47_vm0, %v444_v34 }
  0xee   :  { %1057 = vmatprep.subr.mxu1 %v39_v43 }
  0xf0   :  { %1017 = vmatmul.mubr.msk.f32.vlgmr.msra.gmra.mxu1 %vm47_vm0, %v126_v35 }
  0xf1   :  { %1058 = vmatpush3.msra.mxu1 %v39_v43 }
  0xf2   :  { %1059 = vmatprep.subr.mxu1 %v38_v47 }
  0xf3   :  { %1060 = vmatpush3.msra.mxu1 %v38_v47 }
  0xf4   :  { %1061 = vmatprep.subr.mxu1 %v37_v60 }
  0xf5   :  { %1062 = vmatpush3.msra.mxu1 %v37_v60 }
  0xf6   :  { %1063 = vmatprep.subr.mxu1 %v36_v4 }
  0xf7   :  { %1064 = vmatpush3.msra.mxu1 %v36_v4 }
 0x1b0   :  { %v1018_v39 = vpop.f32.mrf.mxu1 }
 0x1b1   :  { %v602_v41 = vadd.f32 %v1018_v39, %v499_v38 }
 0x1b2   :  { %v596_v42 = vpop.f32.mrf.mxu1 }
 0x1b3   :  { %v597_v44 = vadd.f32 %v596_v42, %v498_v40  ;;  %v609_v45 = vsel %vm605_vm11, %v602_v41, -inf }
 0x1b4   :  { %610 = vmax.xlane.f32.xlu1 %v609_v45 }
 0x1b5   :  { %v606_v46 = vsel %vm605_vm11, %v597_v44, -inf }
 0x1b6   :  { %607 = vmax.xlane.f32.xlu0 %v606_v46 }
 0x1c5   :  { %207 = vrot.lane.b32.xlu1 %v1187_v14, %s1110_s21 }
 0x1c9   :  { %778 = vrot.lane.b32.xlu1 %v1187_v14, %s1112_s30 }
 0x23d   :  { %v611_v17 = vpop.xlane.xlu1 %610 }
 0x23e   :  { %v613_v48 = vsub.f32 %v602_v41, %v611_v17 }
 0x23f   :  { %v608_v22 = vpop.xlane.xlu0 %607 }
 0x240   :  { %v612_v49 = vsub.f32 %v597_v44, %v608_v22  ;;  %v616_v56 = vmul.f32 1.442695, %v613_v48 }
 0x241   :  { %v208_v50 = vpop.permute.xlu1 %207 }
 0x242   :  { %v614_v51 = vmul.f32 1.442695, %v612_v49  ;;  %v283_v53 = vadd.f32 %v282_v24, %v208_v50  ;;  %v288_v54 = vadd.f32 %v999_v16, %v208_v50 }
 0x244   :  { %1077 = vpow2.f32 %v614_v51  ;;  %v459_v57 = vmul.f32 %v1246_v52, %v288_v54  ;;  %v458_v58 = vmul.f32 %v1250_v55, %v283_v53  ;;  %v457_v59 = vmul.f32 %v1263_v1, %v288_v54 }
 0x245   :  { %1079 = vpow2.f32 %v616_v56  ;;  %v456_v61 = vmul.f32 %v1278_v10, %v283_v53  ;;  %v455_v62 = vmul.f32 %v1292_v20, %v288_v54  ;;  %v454_v63 = vmul.f32 %v438_v26, %v283_v53  ;;  %v779_v15 = vpop.permute.xlu1 %778 }
 0x246   :  { %1019 = vmatprep.subr.mxu0 %v459_v57  ;;  %v453_v52 = vmul.f32 %v437_v30, %v288_v54  ;;  %v452_v0 = vmul.f32 %v436_v33, %v283_v53 }
 0x247   :  { %1020 = vmatpush3.msra.mxu0 %v459_v57 }
 0x248   :  { %1021 = vmatprep.subr.mxu0 %v458_v58 }
 0x249   :  { %1022 = vmatpush3.msra.mxu0 %v458_v58 }
 0x24a   :  { %1023 = vmatprep.subr.mxu0 %v457_v59 }
 0x24b   :  { %1024 = vmatpush3.msra.mxu0 %v457_v59 }
 0x24c   :  { %1025 = vmatprep.subr.mxu0 %v456_v61 }
 0x24d   :  { %1026 = vmatpush3.msra.mxu0 %v456_v61 }
 0x24e   :  { %1027 = vmatprep.subr.mxu0 %v455_v62 }
 0x24f   :  { %1028 = vmatpush3.msra.mxu0 %v455_v62 }
 0x250   :  { %1029 = vmatprep.subr.mxu0 %v454_v63 }
 0x251   :  { %v1078_v55 = vpop.eup %1077  ;;  %1030 = vmatpush3.msra.mxu0 %v454_v63 }
 0x252   :  { %1031 = vmatprep.subr.mxu0 %v453_v52  ;;  %1035 = vmatprep.mubr.msk.f32.mxu0 %vm605_vm11, %v1078_v55  ;;  %v1080_v1 = vpop.eup %1079 }
 0x253   :  { %1032 = vmatpush3.msra.mxu0 %v453_v52 }
 0x254   :  { %1033 = vmatprep.subr.mxu0 %v452_v0 }
 0x255   :  { %1034 = vmatpush3.msra.mxu0 %v452_v0 }
 0x256   :  { %1036 = vmatmul.mubr.msk.f32.vlgmr.msra.gmra.mxu0 %vm605_vm11, %v1080_v1  ;;  %1038 = vmatprep.subr.msk.mxu0 %vm1234_vm2, %v1111_v2 }
 0x257   :  { %1039 = vmatpush3.msk.msra.mxu0 %vm1234_vm2, %v1111_v2  ;;  %1054 = vmatprep.mubr.msk.f32.mxu0 %vm605_vm11, %v1078_v55 }
 0x258   :  { %1040 = vmatprep.subr.msk.mxu0 %vm1240_vm3, %v1111_v2 }
 0x259   :  { %1041 = vmatpush3.msk.msra.mxu0 %vm1240_vm3, %v1111_v2 }
 0x25a   :  { %1042 = vmatprep.subr.msk.mxu0 %vm1254_vm4, %v1111_v2 }
 0x25b   :  { %1043 = vmatpush3.msk.msra.mxu0 %vm1254_vm4, %v1111_v2 }
 0x25c   :  { %1044 = vmatprep.subr.msk.mxu0 %vm1268_vm5, %v1111_v2 }
 0x25d   :  { %1045 = vmatpush3.msk.msra.mxu0 %vm1268_vm5, %v1111_v2 }
 0x25e   :  { %1046 = vmatprep.subr.msk.mxu0 %vm1282_vm6, %v1111_v2 }
 0x25f   :  { %1047 = vmatpush3.msk.msra.mxu0 %vm1282_vm6, %v1111_v2 }
 0x260   :  { %1048 = vmatprep.subr.msk.mxu0 %vm1296_vm7, %v1111_v2 }
 0x261   :  { %1049 = vmatpush3.msk.msra.mxu0 %vm1296_vm7, %v1111_v2 }
 0x262   :  { %1050 = vmatprep.subr.msk.mxu0 %vm1307_vm8, %v1111_v2 }
 0x263   :  { %1051 = vmatpush3.msk.msra.mxu0 %vm1307_vm8, %v1111_v2 }
 0x264   :  { %1052 = vmatprep.subr.msk.mxu0 %vm1316_vm9, %v1111_v2 }
 0x265   :  { %1053 = vmatpush3.msk.msra.mxu0 %vm1316_vm9, %v1111_v2 }
 0x266   :  { %1055 = vmatmul.mubr.msk.f32.vlgmr.msra.gmra.mxu0 %vm605_vm11, %v1080_v1 }
 0x316   :  { %v1037_v5 = vpop.f32.mrf.mxu0 }
 0x318   :  { %v690_v7 = vpop.f32.mrf.mxu0 }
 0x326   :  { %v1056_v8 = vpop.f32.mrf.mxu0 }
 0x327   :  { %1081 = vrcp.f32 %v1056_v8 }
 0x328   :  { %v765_v9 = vpop.f32.mrf.mxu0 }
 0x329   :  { %1083 = vrcp.f32 %v765_v9 }
 0x334   :  { %v1082_v10 = vpop.eup %1081 }
 0x335   :  { %v777_v13 = vmul.f32 %v1082_v10, %v1037_v5 }
 0x336   :  { %v1084_v11 = vpop.eup %1083 }
 0x337   :  { %v776_v12 = vmul.f32 %v1084_v11, %v690_v7 }
 0x339   :  { %1065 = vmatprep.mubr.msk.f32.mxu1 %vm47_vm0, %v776_v12 }
 0x33a   :  { %1066 = vmatmul.mubr.msk.f32.vlgmr.msra.gmra.mxu1 %vm47_vm0, %v777_v13 }
 0x3fa   :  { %v1067_v19 = vpop.f32.mrf.mxu1 }
 0x3fb   :  { %v859_v20 = vadd.f32 %v1067_v19, %v779_v15 }
 0x3fc   :  { %v853_v21 = vpop.f32.mrf.mxu1 }
 0x3fd   :  { %v863_v14 = vadd.f32 %v859_v20, %v1162_v6  ;;  %v854_v23 = vadd.f32 %v853_v21, %v779_v15 }
 0x3ff   :  { %865 = vst.msk [vmem:[#allocation2 + $0x8] sm:$0xff] %vm47_vm0, %v863_v14  ;;  %v862_v18 = vadd.f32 %v854_v23, %v1153_v3 }
 0x401   :  { %864 = vst.msk [vmem:[#allocation2] sm:$0xff] %vm47_vm0, %v862_v18 }
 0x402   :  { %1096 = shalt.err (!%p1093_p4)
}
 0x403   :  { %s1114_s7 = smov 128   ;;  %s1115_s8 = smov 8  }
 0x404   :  { %877 = dma.vmem_to_hbm [thread:$0]  %s872_s5, 256, %s1404_s4, [#allocation3], %s1114_s7, %s1114_s7, %s1115_s8  }
 0x405   :  { %1105 = dma.done.wait [#allocation3], 256  }
 0x406   :  { %1106 = vsyncadd [#allocation3], 4294967040 }
 0x407   :  { %881 = vsyncpa [#allocation3], 1 }

</bundles_post_ra>
